<compile_context>
chip_gen: v7x
topology: tpu7x:2x2x1
jax: 0.10.0
libtpu: 0.0.40
codegen_flags: <defaults>
</compile_context>

<pallas_src>
import functools

import jax
import jax.numpy as jnp
from jax import lax
from jax.experimental import pallas as pl
from jax.experimental.pallas import tpu as pltpu

_LANE_W = 1024   # lane-dense last dim (large multiple of 128)
_TILE_R = 256    # rows per grid step -> 1 MiB f32 per tile (fits all generations)


def _hash_u32(x):
    """lowbias32 integer hash (good avalanche on sequential counters)."""
    x = x ^ (x >> jnp.uint32(16))
    x = x * jnp.uint32(0x7FEB352D)
    x = x ^ (x >> jnp.uint32(15))
    x = x * jnp.uint32(0x846CA68B)
    x = x ^ (x >> jnp.uint32(16))
    return x


def _gauss_noise_kernel(seed_ref, x_ref, o_ref, *, std):
    """Elementwise hot path: noise generation + trunc + add + clip, all in VMEM.

    seed_ref: SMEM int32[1]     -- PRNG seed
    x_ref:    VMEM (TILE_R, LW) -- input tile
    o_ref:    VMEM (TILE_R, LW) -- output tile (same dtype as input)
    """
    tr, lw = x_ref.shape

    # Global element index of every lane in this tile -> per-element counter.
    row = lax.broadcasted_iota(jnp.int32, (tr, lw), 0)
    col = lax.broadcasted_iota(jnp.int32, (tr, lw), 1)
    base = pl.program_id(0) * (tr * lw)
    ctr = (base + row * lw + col).astype(jnp.uint32)

    # Counter-based RNG: results depend only on (seed, global index) so they are
    # identical regardless of tiling / core sharding.
    seed_u = seed_ref[0].astype(jnp.uint32)
    bits = _hash_u32(ctr ^ (seed_u * jnp.uint32(0x9E3779B9)))

    # 24 random bits -> uniform strictly inside (-1, 1).
    u24 = (bits >> jnp.uint32(8)).astype(jnp.int32).astype(jnp.float32)
    t = u24 * jnp.float32(2.0 / 16777216.0) + jnp.float32(1.0 / 16777216.0 - 1.0)

    # Standard normal via inverse CDF: z = sqrt(2) * erfinv(t).
    z = jnp.float32(1.4142135623730951) * lax.erf_inv(t)

    # torch.trunc(randn * std).to(int): float->int cast truncates toward zero.
    noise = (z * jnp.float32(std)).astype(jnp.int32).astype(jnp.float32)

    y = x_ref[...].astype(jnp.float32) + noise
    o_ref[...] = jnp.clip(y, 0.0, 255.0).astype(o_ref.dtype)


def random_gauss_noise(img, seed, std=10.0):
    """JAX/Pallas equivalent of RandomGaussNoise(std).forward(img).

    img:  (N, C, H, W) array, values expected in [0, 255] (any real/int dtype)
    seed: python int / int32 scalar controlling the noise draw
    """
    orig_shape = img.shape
    dtype = img.dtype

    # Flatten to a lane-dense 2D slab; pad so it tiles evenly.
    flat = img.reshape(-1)
    n_elem = flat.size
    lane_w = _LANE_W
    n_rows = pl.cdiv(n_elem, lane_w)
    tile_r = min(n_rows, _TILE_R)
    n_rows_pad = pl.cdiv(n_rows, tile_r) * tile_r
    pad = n_rows_pad * lane_w - n_elem
    if pad:
        flat = jnp.pad(flat, (0, pad))
    x2 = flat.reshape(n_rows_pad, lane_w)
    num_tiles = n_rows_pad // tile_r

    seed_arr = jnp.asarray([seed], dtype=jnp.int32)
    kernel = functools.partial(_gauss_noise_kernel, std=float(std))

    elems = x2.size
    out2 = pl.pallas_call(
        kernel,
        out_shape=jax.ShapeDtypeStruct(x2.shape, dtype),
        grid=(num_tiles,),
        in_specs=[
            pl.BlockSpec(memory_space=pltpu.MemorySpace.SMEM),     # seed scalar
            pl.BlockSpec((tile_r, lane_w), lambda i: (i, 0)),      # input row tile
        ],
        out_specs=pl.BlockSpec((tile_r, lane_w), lambda i: (i, 0)),
        compiler_params=pltpu.CompilerParams(
            dimension_semantics=("parallel",)),                    # v7x: 2 TCs
        cost_estimate=pl.CostEstimate(
            flops=40 * elems,
            transcendentals=2 * elems,
            bytes_accessed=2 * elems * x2.dtype.itemsize),
    )(seed_arr, x2)

    out_flat = out2.reshape(-1)
    if pad:
        out_flat = out_flat[:n_elem]
    return out_flat.reshape(orig_shape)


if __name__ == "__main__":
    key = jax.random.PRNGKey(0)
    # Small NCHW image batch with values in [0, 255], matching the module's contract.
    img = jax.random.uniform(
        key, (2, 4, 16, 16), dtype=jnp.float32, minval=0.0, maxval=255.0
    )

    out = random_gauss_noise(img, seed=0, std=10.0)
    out = jax.block_until_ready(out)

    # Shape / dtype preserved, values clipped to [0, 255].
    assert out.shape == img.shape
    assert out.dtype == img.dtype
    assert bool(jnp.all(out >= 0.0)) and bool(jnp.all(out <= 255.0))

    delta = out - img
    # Noise was actually applied and has roughly the right scale.
    assert float(jnp.std(delta)) > 1.0
    # Noise is integer-valued wherever clipping did not kick in.
    interior = (out > 0.0) & (out < 255.0)
    frac = jnp.abs(delta - jnp.round(delta))
    assert bool(jnp.all(jnp.where(interior, frac < 1e-3, True)))

    # Deterministic in the seed (grid/core-invariant noise stream).
    out_same = jax.block_until_ready(random_gauss_noise(img, seed=0, std=10.0))
    assert bool(jnp.all(out == out_same))

    print("KERNEL_OK")
</pallas_src>

<mosaic_0001>
module attributes {stable_mosaic.version = 11 : i64} {
  func.func @_gauss_noise_kernel(%arg0: i32, %arg1: memref<1xi32, #tpu.memory_space<smem>>, %arg2: memref<2x1024xf32, #tpu.memory_space<vmem>>, %arg3: memref<2x1024xf32, #tpu.memory_space<vmem>>) attributes {dimension_semantics = [#tpu.dimension_semantics<parallel>], iteration_bounds = array<i64: 1>, scalar_prefetch = 0 : i64, scratch_operands = 0 : i64, tpu.core_type = #tpu.core_type<tc>, window_params = [{transform_indices = @transform_0, window_bounds = array<i64: 1>}, {transform_indices = @transform_1, window_bounds = array<i64: 2, 1024>}, {transform_indices = @transform_2, window_bounds = array<i64: 2, 1024>}]} {
    %0 = tpu.iota {dimensions = array<i32: 0>} : vector<2x1024xi32>
    %1 = tpu.iota {dimensions = array<i32: 1>} : vector<2x1024xi32>
    %c2048_i32 = arith.constant 2048 : i32
    %2 = arith.muli %arg0, %c2048_i32 : i32
    %c1024_i32 = arith.constant 1024 : i32
    %3 = vector.broadcast %c1024_i32 : i32 to vector<2x1024xi32>
    %4 = arith.muli %0, %3 : vector<2x1024xi32>
    %5 = vector.broadcast %2 : i32 to vector<2x1024xi32>
    %6 = arith.addi %5, %4 : vector<2x1024xi32>
    %7 = arith.addi %6, %1 : vector<2x1024xi32>
    %c0 = arith.constant 0 : index
    %8 = memref.load %arg1[%c0] : memref<1xi32, #tpu.memory_space<smem>>
    %c-1640531527_i32 = arith.constant -1640531527 : i32
    %9 = arith.muli %8, %c-1640531527_i32 : i32
    %10 = vector.broadcast %9 : i32 to vector<2x1024xi32>
    %11 = arith.xori %7, %10 : vector<2x1024xi32>
    %c16_i32 = arith.constant 16 : i32
    %12 = vector.broadcast %c16_i32 : i32 to vector<2x1024xi32>
    %13 = arith.shrui %11, %12 : vector<2x1024xi32>
    %14 = arith.xori %11, %13 : vector<2x1024xi32>
    %c2146121005_i32 = arith.constant 2146121005 : i32
    %15 = vector.broadcast %c2146121005_i32 : i32 to vector<2x1024xi32>
    %16 = arith.muli %14, %15 : vector<2x1024xi32>
    %c15_i32 = arith.constant 15 : i32
    %17 = vector.broadcast %c15_i32 : i32 to vector<2x1024xi32>
    %18 = arith.shrui %16, %17 : vector<2x1024xi32>
    %19 = arith.xori %16, %18 : vector<2x1024xi32>
    %c-2073254261_i32 = arith.constant -2073254261 : i32
    %20 = vector.broadcast %c-2073254261_i32 : i32 to vector<2x1024xi32>
    %21 = arith.muli %19, %20 : vector<2x1024xi32>
    %c16_i32_0 = arith.constant 16 : i32
    %22 = vector.broadcast %c16_i32_0 : i32 to vector<2x1024xi32>
    %23 = arith.shrui %21, %22 : vector<2x1024xi32>
    %24 = arith.xori %21, %23 : vector<2x1024xi32>
    %c8_i32 = arith.constant 8 : i32
    %25 = vector.broadcast %c8_i32 : i32 to vector<2x1024xi32>
    %26 = arith.shrui %24, %25 : vector<2x1024xi32>
    %27 = arith.sitofp %26 : vector<2x1024xi32> to vector<2x1024xf32>
    %cst = arith.constant 1.1920929E-7 : f32
    %28 = vector.broadcast %cst : f32 to vector<2x1024xf32>
    %29 = arith.mulf %27, %28 : vector<2x1024xf32>
    %cst_1 = arith.constant -0.99999994 : f32
    %30 = vector.broadcast %cst_1 : f32 to vector<2x1024xf32>
    %31 = arith.addf %29, %30 : vector<2x1024xf32>
    %cst_2 = arith.constant 0.000000e+00 : f32
    %32 = vector.broadcast %cst_2 : f32 to vector<2x1024xf32>
    %33 = arith.subf %32, %31 : vector<2x1024xf32>
    %34 = arith.mulf %31, %33 : vector<2x1024xf32>
    %35 = math.log1p %34 : vector<2x1024xf32>
    %cst_3 = arith.constant 0.000000e+00 : f32
    %36 = vector.broadcast %cst_3 : f32 to vector<2x1024xf32>
    %37 = arith.subf %36, %35 : vector<2x1024xf32>
    %cst_4 = arith.constant 5.000000e+00 : f32
    %38 = vector.broadcast %cst_4 : f32 to vector<2x1024xf32>
    %39 = arith.cmpf olt, %37, %38 : vector<2x1024xf32>
    %cst_5 = arith.constant 2.500000e+00 : f32
    %40 = vector.broadcast %cst_5 : f32 to vector<2x1024xf32>
    %41 = arith.subf %37, %40 : vector<2x1024xf32>
    %42 = math.sqrt %37 : vector<2x1024xf32>
    %cst_6 = arith.constant 3.000000e+00 : f32
    %43 = vector.broadcast %cst_6 : f32 to vector<2x1024xf32>
    %44 = arith.subf %42, %43 : vector<2x1024xf32>
    %45 = arith.select %39, %41, %44 : vector<2x1024xi1>, vector<2x1024xf32>
    %cst_7 = arith.constant 2.81022636E-8 : f32
    %cst_8 = arith.constant -2.00214257E-4 : f32
    %46 = vector.broadcast %cst_7 : f32 to vector<2x1024xf32>
    %47 = vector.broadcast %cst_8 : f32 to vector<2x1024xf32>
    %48 = arith.select %39, %46, %47 : vector<2x1024xi1>, vector<2x1024xf32>
    %cst_9 = arith.constant 3.43273939E-7 : f32
    %cst_10 = arith.constant 1.00950558E-4 : f32
    %49 = vector.broadcast %cst_9 : f32 to vector<2x1024xf32>
    %50 = vector.broadcast %cst_10 : f32 to vector<2x1024xf32>
    %51 = arith.select %39, %49, %50 : vector<2x1024xi1>, vector<2x1024xf32>
    %52 = arith.mulf %48, %45 : vector<2x1024xf32>
    %53 = arith.addf %51, %52 : vector<2x1024xf32>
    %cst_11 = arith.constant -3.5233877E-6 : f32
    %cst_12 = arith.constant 0.00134934322 : f32
    %54 = vector.broadcast %cst_11 : f32 to vector<2x1024xf32>
    %55 = vector.broadcast %cst_12 : f32 to vector<2x1024xf32>
    %56 = arith.select %39, %54, %55 : vector<2x1024xi1>, vector<2x1024xf32>
    %57 = arith.mulf %53, %45 : vector<2x1024xf32>
    %58 = arith.addf %56, %57 : vector<2x1024xf32>
    %cst_13 = arith.constant -4.39150654E-6 : f32
    %cst_14 = arith.constant -0.00367342844 : f32
    %59 = vector.broadcast %cst_13 : f32 to vector<2x1024xf32>
    %60 = vector.broadcast %cst_14 : f32 to vector<2x1024xf32>
    %61 = arith.select %39, %59, %60 : vector<2x1024xi1>, vector<2x1024xf32>
    %62 = arith.mulf %58, %45 : vector<2x1024xf32>
    %63 = arith.addf %61, %62 : vector<2x1024xf32>
    %cst_15 = arith.constant 2.1858087E-4 : f32
    %cst_16 = arith.constant 0.00573950773 : f32
    %64 = vector.broadcast %cst_15 : f32 to vector<2x1024xf32>
    %65 = vector.broadcast %cst_16 : f32 to vector<2x1024xf32>
    %66 = arith.select %39, %64, %65 : vector<2x1024xi1>, vector<2x1024xf32>
    %67 = arith.mulf %63, %45 : vector<2x1024xf32>
    %68 = arith.addf %66, %67 : vector<2x1024xf32>
    %cst_17 = arith.constant -0.00125372503 : f32
    %cst_18 = arith.constant -0.0076224613 : f32
    %69 = vector.broadcast %cst_17 : f32 to vector<2x1024xf32>
    %70 = vector.broadcast %cst_18 : f32 to vector<2x1024xf32>
    %71 = arith.select %39, %69, %70 : vector<2x1024xi1>, vector<2x1024xf32>
    %72 = arith.mulf %68, %45 : vector<2x1024xf32>
    %73 = arith.addf %71, %72 : vector<2x1024xf32>
    %cst_19 = arith.constant -0.00417768164 : f32
    %cst_20 = arith.constant 0.00943887047 : f32
    %74 = vector.broadcast %cst_19 : f32 to vector<2x1024xf32>
    %75 = vector.broadcast %cst_20 : f32 to vector<2x1024xf32>
    %76 = arith.select %39, %74, %75 : vector<2x1024xi1>, vector<2x1024xf32>
    %77 = arith.mulf %73, %45 : vector<2x1024xf32>
    %78 = arith.addf %76, %77 : vector<2x1024xf32>
    %cst_21 = arith.constant 0.246640727 : f32
    %cst_22 = arith.constant 1.00167406 : f32
    %79 = vector.broadcast %cst_21 : f32 to vector<2x1024xf32>
    %80 = vector.broadcast %cst_22 : f32 to vector<2x1024xf32>
    %81 = arith.select %39, %79, %80 : vector<2x1024xi1>, vector<2x1024xf32>
    %82 = arith.mulf %78, %45 : vector<2x1024xf32>
    %83 = arith.addf %81, %82 : vector<2x1024xf32>
    %cst_23 = arith.constant 1.50140941 : f32
    %cst_24 = arith.constant 2.83297682 : f32
    %84 = vector.broadcast %cst_23 : f32 to vector<2x1024xf32>
    %85 = vector.broadcast %cst_24 : f32 to vector<2x1024xf32>
    %86 = arith.select %39, %84, %85 : vector<2x1024xi1>, vector<2x1024xf32>
    %87 = arith.mulf %83, %45 : vector<2x1024xf32>
    %88 = arith.addf %86, %87 : vector<2x1024xf32>
    %89 = math.absf %31 : vector<2x1024xf32>
    %cst_25 = arith.constant 1.000000e+00 : f32
    %90 = vector.broadcast %cst_25 : f32 to vector<2x1024xf32>
    %91 = arith.cmpf oeq, %89, %90 : vector<2x1024xf32>
    %cst_26 = arith.constant 0x7F800000 : f32
    %92 = vector.broadcast %cst_26 : f32 to vector<2x1024xf32>
    %93 = arith.mulf %92, %31 : vector<2x1024xf32>
    %94 = arith.mulf %88, %31 : vector<2x1024xf32>
    %95 = arith.select %91, %93, %94 : vector<2x1024xi1>, vector<2x1024xf32>
    %cst_27 = arith.constant 1.41421354 : f32
    %96 = vector.broadcast %cst_27 : f32 to vector<2x1024xf32>
    %97 = arith.mulf %96, %95 : vector<2x1024xf32>
    %cst_28 = arith.constant 1.000000e+01 : f32
    %98 = vector.broadcast %cst_28 : f32 to vector<2x1024xf32>
    %99 = arith.mulf %97, %98 : vector<2x1024xf32>
    %100 = arith.fptosi %99 : vector<2x1024xf32> to vector<2x1024xi32>
    %101 = arith.sitofp %100 : vector<2x1024xi32> to vector<2x1024xf32>
    %c0_29 = arith.constant 0 : index
    %c0_30 = arith.constant 0 : index
    %102 = vector.load %arg2[%c0_29, %c0_30] : memref<2x1024xf32, #tpu.memory_space<vmem>>, vector<2x1024xf32>
    %103 = arith.addf %102, %101 : vector<2x1024xf32>
    %cst_31 = arith.constant 0.000000e+00 : f32
    %cst_32 = arith.constant 2.550000e+02 : f32
    %104 = vector.broadcast %cst_31 : f32 to vector<2x1024xf32>
    %105 = arith.maximumf %104, %103 : vector<2x1024xf32>
    %106 = vector.broadcast %cst_32 : f32 to vector<2x1024xf32>
    %107 = arith.minimumf %106, %105 : vector<2x1024xf32>
    %c0_33 = arith.constant 0 : index
    %c0_34 = arith.constant 0 : index
    %108 = vector.load %arg3[%c0_33, %c0_34] : memref<2x1024xf32, #tpu.memory_space<vmem>>, vector<2x1024xf32>
    tpu.vector_store %arg3[%c0_33, %c0_34], %107 {strides = array<i32>} : memref<2x1024xf32, #tpu.memory_space<vmem>>, vector<2x1024xf32>,
    return
  }
  func.func @transform_0(%arg0: i32) -> i32 {
    %c0_i32 = arith.constant 0 : i32
    %c0_i32_0 = arith.constant 0 : i32
    return %c0_i32 : i32
  }
  func.func @transform_1(%arg0: i32) -> (i32, i32) {
    %c0_i32 = arith.constant 0 : i32
    %c0_i32_0 = arith.constant 0 : i32
    return %arg0, %c0_i32 : i32, i32
  }
  func.func @transform_2(%arg0: i32) -> (i32, i32) {
    %c0_i32 = arith.constant 0 : i32
    %c0_i32_0 = arith.constant 0 : i32
    return %arg0, %c0_i32 : i32, i32
  }
}

</mosaic_0001>

<bundles_post_ra>
// kernel: tpu_custom_call.1
= control target key start
LH: loop header
LB: loop body
LE: loop exit
PB: predicated region body
PF: predicated region fallthrough
CT: control target
= control target key end

     0   :  { %8 = vsyncpa [#allocation4], 0  ;;  %s1398_s0 = inlined_call_operand.<no memory space> [shape: s32[1], index: 0, kind: input, shape index: {}]   ;;  %s1399_s1 = inlined_call_operand.hbm [shape: f32[2,1024], index: 1, kind: input, shape index: {}]   ;;  %s1400_s2 = inlined_call_operand.hbm [shape: f32[2,1024], index: 2, kind: output, shape index: {}]  }
   0x1   :  { %9 = vsyncpa [#allocation5], 0  ;;  %s804_s9 = smov [#allocation3]   ;;  %s756_s13 = scalar_lea.hbm %s1399_s1, 256 }
   0x2   :  { %s18_s10 = sshll.u32 %s804_s9, 4  ;;  %p757_p0 = scmp.ne.s32.totalorder %s1399_s1, %s756_s13  ;;  %s19_s10 = int_to_ptr.vmem [resolvable:$true] %s18_s10 }
   0x3   :  { %p760_p1 = scmp.lt.u32.totalorder %s756_s13, %s1399_s1 }
   0x5   :  { %p762_p2 = pnand %p760_p1, %p757_p0 }
   0x7   :  { %765 = shalt.err (!%p762_p2)
}
   0x8   :  { %s766_s18 = scalar_lea.vmem %s19_s10, 256  ;;  %p771_p4 = scmp.lt.s32.totalorder %s19_s10, %s19_s10 }
   0x9   :  { %p767_p3 = scmp.ne.s32.totalorder %s19_s10, %s766_s18  ;;  %p772_p5 = scmp.lt.s32.totalorder %s766_s18, %s766_s18 }
   0xb   :  { %p773_p6 = por %p772_p5, %p771_p4 }
   0xd   :  { %p774_p7 = pnand %p773_p6, %p767_p3 }
   0xf   :  { %777 = shalt.err (!%p774_p7)
}
  0x10   :  { %21 = dma.hbm_to_vmem [thread:$0]  %s1399_s1, 256, %s19_s10, [#allocation4]  }
  0x11   :  { %800 = dma.done.wait [#allocation4], 256  }
  0x12   :  { %801 = vsyncadd [#allocation4], 4294967040  ;;  %v25_v0 = vlaneseq  ;;  %s49_s23 = smul.u32 2654435769, %s1398_s0  ;;  %s815_s0 = smov [#allocation6]  }
  0x13   :  { %s671_s1 = sshll.u32 %s815_s0, 4  ;;  %s672_s1 = int_to_ptr.vmem [resolvable:$true] %s671_s1 }
  0x14   :  { %v843_v1 = vshrl.u32 %v25_v0, 7  ;;  %v28_v2 = vand.u32 127, %v25_v0  ;;  %v50_v11 = vstv %s49_s23  ;;  %s778_s24 = scalar_lea.vmem %s672_s1, 256  ;;  %p783_p9 = scmp.lt.s32.totalorder %s672_s1, %s672_s1 }
  0x15   :  { %p779_p8 = scmp.ne.s32.totalorder %s672_s1, %s778_s24  ;;  %p784_p10 = scmp.lt.s32.totalorder %s778_s24, %s778_s24 }
  0x16   :  { %v29_v3 = vadd.s32 128, %v28_v2  ;;  %v30_v4 = vadd.s32 256, %v28_v2  ;;  %v31_v5 = vadd.s32 384, %v28_v2  ;;  %v32_v6 = vadd.s32 512, %v28_v2 }
  0x17   :  { %v33_v7 = vadd.s32 640, %v28_v2  ;;  %v34_v8 = vadd.s32 768, %v28_v2  ;;  %v35_v9 = vadd.s32 896, %v28_v2  ;;  %v37_v10 = vmul.u32 1024, %v843_v1  ;;  %p785_p11 = por %p784_p10, %p783_p9 }
  0x19   :  { %v40_v12 = vadd.s32 %v37_v10, %v28_v2  ;;  %v41_v13 = vadd.s32 %v37_v10, %v29_v3  ;;  %v42_v14 = vadd.s32 %v37_v10, %v30_v4  ;;  %v43_v15 = vadd.s32 %v37_v10, %v31_v5  ;;  %p786_p12 = pnand %p785_p11, %p779_p8 }
  0x1a   :  { %v44_v16 = vadd.s32 %v37_v10, %v32_v6  ;;  %v45_v17 = vadd.s32 %v37_v10, %v33_v7  ;;  %v46_v18 = vadd.s32 %v37_v10, %v34_v8  ;;  %v47_v19 = vadd.s32 %v37_v10, %v35_v9 }
  0x1b   :  { %v51_v20 = vxor.u32 %v50_v11, %v40_v12  ;;  %v52_v21 = vxor.u32 %v50_v11, %v41_v13  ;;  %v53_v22 = vxor.u32 %v50_v11, %v42_v14  ;;  %v54_v23 = vxor.u32 %v50_v11, %v43_v15 }
  0x1c   :  { %v55_v24 = vxor.u32 %v50_v11, %v44_v16  ;;  %v56_v25 = vxor.u32 %v50_v11, %v45_v17  ;;  %v57_v26 = vxor.u32 %v50_v11, %v46_v18  ;;  %v58_v27 = vxor.u32 %v50_v11, %v47_v19 }
  0x1d   :  { %v59_v28 = vshrl.u32 %v51_v20, 16  ;;  %v60_v29 = vshrl.u32 %v52_v21, 16  ;;  %v61_v30 = vshrl.u32 %v53_v22, 16  ;;  %v62_v31 = vshrl.u32 %v54_v23, 16 }
  0x1e   :  { %v63_v32 = vshrl.u32 %v55_v24, 16  ;;  %v64_v33 = vshrl.u32 %v56_v25, 16  ;;  %v65_v34 = vshrl.u32 %v57_v26, 16  ;;  %v66_v35 = vshrl.u32 %v58_v27, 16 }
  0x1f   :  { %v67_v36 = vxor.u32 %v59_v28, %v51_v20  ;;  %v68_v37 = vxor.u32 %v60_v29, %v52_v21  ;;  %v69_v38 = vxor.u32 %v61_v30, %v53_v22  ;;  %v70_v39 = vxor.u32 %v62_v31, %v54_v23 }
  0x20   :  { %v71_v40 = vxor.u32 %v63_v32, %v55_v24  ;;  %v72_v41 = vxor.u32 %v64_v33, %v56_v25  ;;  %v73_v42 = vxor.u32 %v65_v34, %v57_v26  ;;  %v74_v43 = vxor.u32 %v66_v35, %v58_v27 }
  0x21   :  { %v75_v44 = vmul.u32 2146121005, %v67_v36  ;;  %v76_v45 = vmul.u32 2146121005, %v68_v37 }
  0x22   :  { %v77_v46 = vmul.u32 2146121005, %v69_v38  ;;  %v78_v47 = vmul.u32 2146121005, %v70_v39 }
  0x23   :  { %v79_v48 = vmul.u32 2146121005, %v71_v40  ;;  %v80_v49 = vmul.u32 2146121005, %v72_v41  ;;  %v83_v50 = vshrl.u32 %v75_v44, 15  ;;  %v84_v51 = vshrl.u32 %v76_v45, 15 }
  0x24   :  { %v81_v52 = vmul.u32 2146121005, %v73_v42  ;;  %v82_v53 = vmul.u32 2146121005, %v74_v43  ;;  %v85_v54 = vshrl.u32 %v77_v46, 15  ;;  %v86_v55 = vshrl.u32 %v78_v47, 15 }
  0x25   :  { %v87_v56 = vshrl.u32 %v79_v48, 15  ;;  %v88_v57 = vshrl.u32 %v80_v49, 15  ;;  %v91_v58 = vxor.u32 %v83_v50, %v75_v44  ;;  %v92_v59 = vxor.u32 %v84_v51, %v76_v45 }
  0x26   :  { %v89_v60 = vshrl.u32 %v81_v52, 15  ;;  %v90_v61 = vshrl.u32 %v82_v53, 15  ;;  %v93_v62 = vxor.u32 %v85_v54, %v77_v46  ;;  %v94_v63 = vxor.u32 %v86_v55, %v78_v47 }
  0x27   :  { %v95_v0 = vxor.u32 %v87_v56, %v79_v48  ;;  %v96_v2 = vxor.u32 %v88_v57, %v80_v49  ;;  %v99_v3 = vmul.u32 2221713035, %v91_v58  ;;  %v100_v4 = vmul.u32 2221713035, %v92_v59 }
  0x28   :  { %v97_v5 = vxor.u32 %v89_v60, %v81_v52  ;;  %v98_v6 = vxor.u32 %v90_v61, %v82_v53  ;;  %v101_v7 = vmul.u32 2221713035, %v93_v62  ;;  %v102_v8 = vmul.u32 2221713035, %v94_v63 }
  0x29   :  { %v103_v9 = vmul.u32 2221713035, %v95_v0  ;;  %v104_v10 = vmul.u32 2221713035, %v96_v2  ;;  %v107_v11 = vshrl.u32 %v99_v3, 16  ;;  %v108_v12 = vshrl.u32 %v100_v4, 16 }
  0x2a   :  { %v105_v13 = vmul.u32 2221713035, %v97_v5  ;;  %v106_v14 = vmul.u32 2221713035, %v98_v6  ;;  %v109_v15 = vshrl.u32 %v101_v7, 16  ;;  %v110_v16 = vshrl.u32 %v102_v8, 16 }
  0x2b   :  { %v111_v17 = vshrl.u32 %v103_v9, 16  ;;  %v112_v18 = vshrl.u32 %v104_v10, 16  ;;  %v115_v19 = vxor.u32 %v107_v11, %v99_v3  ;;  %v116_v20 = vxor.u32 %v108_v12, %v100_v4 }
  0x2c   :  { %v113_v21 = vshrl.u32 %v105_v13, 16  ;;  %v114_v22 = vshrl.u32 %v106_v14, 16  ;;  %v117_v23 = vxor.u32 %v109_v15, %v101_v7  ;;  %v118_v24 = vxor.u32 %v110_v16, %v102_v8 }
  0x2d   :  { %v119_v25 = vxor.u32 %v111_v17, %v103_v9  ;;  %v120_v26 = vxor.u32 %v112_v18, %v104_v10  ;;  %v123_v27 = vshrl.u32 %v115_v19, 8  ;;  %v124_v28 = vshrl.u32 %v116_v20, 8 }
  0x2e   :  { %v121_v29 = vxor.u32 %v113_v21, %v105_v13  ;;  %v122_v30 = vxor.u32 %v114_v22, %v106_v14  ;;  %v125_v31 = vshrl.u32 %v117_v23, 8  ;;  %v126_v32 = vshrl.u32 %v118_v24, 8 }
  0x2f   :  { %v127_v33 = vshrl.u32 %v119_v25, 8  ;;  %v128_v34 = vshrl.u32 %v120_v26, 8  ;;  %v131_v35 = vcvt.s32.f32 %v123_v27  ;;  %v132_v36 = vcvt.s32.f32 %v124_v28 }
  0x30   :  { %v129_v37 = vshrl.u32 %v121_v29, 8  ;;  %v130_v38 = vshrl.u32 %v122_v30, 8  ;;  %v133_v39 = vcvt.s32.f32 %v125_v31  ;;  %v134_v40 = vcvt.s32.f32 %v126_v32 }
  0x31   :  { %v135_v41 = vcvt.s32.f32 %v127_v33  ;;  %v136_v42 = vcvt.s32.f32 %v128_v34  ;;  %v139_v43 = vmul.f32 1.1920929e-07, %v131_v35  ;;  %v140_v44 = vmul.f32 1.1920929e-07, %v132_v36 }
  0x32   :  { %v137_v45 = vcvt.s32.f32 %v129_v37  ;;  %v138_v46 = vcvt.s32.f32 %v130_v38  ;;  %v141_v47 = vmul.f32 1.1920929e-07, %v133_v39  ;;  %v142_v48 = vmul.f32 1.1920929e-07, %v134_v40 }
  0x33   :  { %v143_v49 = vmul.f32 1.1920929e-07, %v135_v41  ;;  %v144_v50 = vmul.f32 1.1920929e-07, %v136_v42  ;;  %v849_v51 = vadd.f32 -0.99999994, %v139_v43  ;;  %v851_v52 = vadd.f32 -0.99999994, %v140_v44 }
  0x34   :  { %v145_v53 = vmul.f32 1.1920929e-07, %v137_v45  ;;  %v146_v54 = vmul.f32 1.1920929e-07, %v138_v46  ;;  %v853_v55 = vadd.f32 -0.99999994, %v141_v47  ;;  %v855_v56 = vadd.f32 -0.99999994, %v142_v48 }
  0x35   :  { %v857_v57 = vadd.f32 -0.99999994, %v143_v49  ;;  %v859_v58 = vadd.f32 -0.99999994, %v144_v50  ;;  %v155_v59 = vsub.f32 0.0, %v849_v51  ;;  %v156_v60 = vsub.f32 0.0, %v851_v52 }
  0x36   :  { %v157_v61 = vsub.f32 0.0, %v853_v55  ;;  %v158_v62 = vsub.f32 0.0, %v855_v56  ;;  %v865_v63 = vadd.f32 -0.99999994, %v145_v53  ;;  %v871_v5 = vadd.f32 -0.99999994, %v146_v54 }
  0x37   :  { %v159_v0 = vsub.f32 0.0, %v857_v57  ;;  %v163_v2 = vmul.f32 %v155_v59, %v849_v51  ;;  %v164_v3 = vmul.f32 %v156_v60, %v851_v52  ;;  %v160_v6 = vsub.f32 0.0, %v859_v58 }
  0x38   :  { %v165_v4 = vmul.f32 %v157_v61, %v853_v55  ;;  %v166_v8 = vmul.f32 %v158_v62, %v855_v56  ;;  %v161_v11 = vsub.f32 0.0, %v865_v63  ;;  %v162_v16 = vsub.f32 0.0, %v871_v5 }
  0x39   :  { %v171_v7 = vadd.f32 1.0, %v163_v2  ;;  %v174_v9 = vmul.f32 -0.5, %v163_v2  ;;  %v180_v10 = vadd.f32 1.0, %v164_v3  ;;  %v167_v12 = vmul.f32 %v159_v0, %v857_v57 }
  0x3a   :  { %v183_v13 = vmul.f32 -0.5, %v164_v3  ;;  %v189_v14 = vadd.f32 1.0, %v165_v4  ;;  %v192_v15 = vmul.f32 -0.5, %v165_v4  ;;  %v168_v17 = vmul.f32 %v160_v6, %v859_v58 }
  0x3b   :  { %724 = vlog2.f32 %v171_v7  ;;  %v177_v18 = vand.u32 2147483647, %v163_v2  ;;  %v175_v19 = vadd.f32 1.0, %v174_v9  ;;  %v186_v20 = vand.u32 2147483647, %v164_v3 }
  0x3c   :  { %726 = vlog2.f32 %v180_v10  ;;  %v198_v21 = vadd.f32 1.0, %v166_v8  ;;  %v169_v22 = vmul.f32 %v161_v11, %v865_v63  ;;  %v184_v23 = vadd.f32 1.0, %v183_v13 }
  0x3d   :  { %728 = vlog2.f32 %v189_v14  ;;  %v207_v24 = vadd.f32 1.0, %v167_v12  ;;  %v193_v25 = vadd.f32 1.0, %v192_v15  ;;  %v195_v26 = vand.u32 2147483647, %v165_v4 }
  0x3e   :  { %730 = vlog2.f32 %v198_v21  ;;  %v201_v27 = vmul.f32 -0.5, %v166_v8  ;;  %v170_v28 = vmul.f32 %v162_v16, %v871_v5  ;;  %vm881_vm0 = vcmp.lt.f32.partialorder %v177_v18, 0.0004427343 }
  0x3f   :  { %732 = vlog2.f32 %v207_v24  ;;  %v216_v30 = vadd.f32 1.0, %v168_v17  ;;  %v176_v31 = vmul.f32 %v175_v19, %v163_v2  ;;  %vm885_vm1 = vcmp.lt.f32.partialorder %v186_v20, 0.0004427343 }
  0x40   :  { %v210_v33 = vmul.f32 -0.5, %v167_v12  ;;  %v219_v34 = vmul.f32 -0.5, %v168_v17  ;;  %v185_v35 = vmul.f32 %v184_v23, %v164_v3  ;;  %v225_v36 = vadd.f32 1.0, %v169_v22 }
  0x41   :  { %734 = vlog2.f32 %v216_v30  ;;  %v228_v37 = vmul.f32 -0.5, %v169_v22  ;;  %v194_v38 = vmul.f32 %v193_v25, %v165_v4  ;;  %vm889_vm2 = vcmp.lt.f32.partialorder %v195_v26, 0.0004427343 }
  0x42   :  { %v202_v40 = vadd.f32 1.0, %v201_v27  ;;  %v204_v41 = vand.u32 2147483647, %v166_v8  ;;  %v213_v43 = vand.u32 2147483647, %v167_v12  ;;  %736 = vlog2.f32 %v225_v36 }
  0x43   :  { %v234_v44 = vadd.f32 1.0, %v170_v28  ;;  %v237_v45 = vmul.f32 -0.5, %v170_v28  ;;  %v211_v48 = vadd.f32 1.0, %v210_v33  ;;  %v220_v49 = vadd.f32 1.0, %v219_v34 }
  0x44   :  { %v222_v50 = vand.u32 2147483647, %v168_v17  ;;  %v229_v54 = vadd.f32 1.0, %v228_v37  ;;  %v231_v59 = vand.u32 2147483647, %v169_v22  ;;  %v203_v62 = vmul.f32 %v202_v40, %v166_v8 }
  0x45   :  { %v725_v42 = vpop.eup %724  ;;  %738 = vlog2.f32 %v234_v44  ;;  %vm895_vm3 = vcmp.lt.f32.partialorder %v204_v41, 0.0004427343  ;;  %v240_v2 = vand.u32 2147483647, %v170_v28  ;;  %v238_v6 = vadd.f32 1.0, %v237_v45 }
  0x46   :  { %v727_v46 = vpop.eup %726  ;;  %v173_v47 = vmul.f32 0.6931472, %v725_v42  ;;  %v212_v10 = vmul.f32 %v211_v48, %v167_v12  ;;  %vm903_vm4 = vcmp.lt.f32.partialorder %v213_v43, 0.0004427343  ;;  %v221_v13 = vmul.f32 %v220_v49, %v168_v17 }
  0x47   :  { %v182_v53 = vmul.f32 0.6931472, %v727_v46  ;;  %v729_v60 = vpop.eup %728  ;;  %vm907_vm5 = vcmp.lt.f32.partialorder %v222_v50, 0.0004427343  ;;  %v230_v16 = vmul.f32 %v229_v54, %v169_v22  ;;  %vm911_vm6 = vcmp.lt.f32.partialorder %v231_v59, 0.0004427343 }
  0x48   :  { %v179_v61 = vsel %vm881_vm0, %v176_v31, %v173_v47  ;;  %v191_v4 = vmul.f32 0.6931472, %v729_v60  ;;  %v731_v9 = vpop.eup %730  ;;  %vm919_vm7 = vcmp.lt.f32.partialorder %v240_v2, 0.0004427343  ;;  %v539_v17 = vand.u32 2147483647, %v849_v51 }
  0x49   :  { %v188_v3 = vsel %vm885_vm1, %v185_v35, %v182_v53  ;;  %v901_v7 = vsub.f32 0.0, %v179_v61  ;;  %v733_v14 = vpop.eup %732  ;;  %v200_v15 = vmul.f32 0.6931472, %v731_v9  ;;  %v239_v24 = vmul.f32 %v238_v6, %v170_v28 }
  0x4a   :  { %v915_v19 = vsub.f32 0.0, %v188_v3  ;;  %v197_v12 = vsel %vm889_vm2, %v194_v38, %v191_v4  ;;  %v209_v20 = vmul.f32 0.6931472, %v733_v14  ;;  %v540_v25 = vand.u32 2147483647, %v851_v52 }
  0x4b   :  { %v735_v23 = vpop.eup %734  ;;  %v206_v22 = vsel %vm895_vm3, %v203_v62, %v200_v15  ;;  %740 = vrsqrt.f32 %v901_v7  ;;  %v541_v29 = vand.u32 2147483647, %v853_v55  ;;  %v542_v30 = vand.u32 2147483647, %v855_v56 }
  0x4c   :  { %v215_v26 = vsel %vm903_vm4, %v212_v10, %v209_v20  ;;  %v218_v27 = vmul.f32 0.6931472, %v735_v23  ;;  %v737_v31 = vpop.eup %736  ;;  %v932_v32 = vsub.f32 0.0, %v197_v12  ;;  %v935_v33 = vadd.f32 -2.5, %v901_v7 }
  0x4d   :  { %v938_v28 = vadd.f32 -2.5, %v915_v19  ;;  %742 = vrsqrt.f32 %v915_v19  ;;  %v227_v35 = vmul.f32 0.6931472, %v737_v31  ;;  %v943_v36 = vsub.f32 0.0, %v206_v22 }
  0x4e   :  { %v224_v34 = vsel %vm907_vm5, %v221_v13, %v218_v27  ;;  %vm269_vm8 = vcmp.eq.f32.partialorder %v901_v7, inf  ;;  %v946_v38 = vsub.f32 0.0, %v215_v26  ;;  %vm251_vm9 = vcmp.lt.f32.partialorder %v901_v7, 5.0 }
  0x4f   :  { %v739_v37 = vpop.eup %738  ;;  %v950_v39 = vadd.f32 -2.5, %v932_v32  ;;  %vm271_vm10 = vcmp.eq.f32.partialorder %v901_v7, 0.0  ;;  %v272_v40 = vand.u32 2147483648, %v901_v7  ;;  %v233_v41 = vsel %vm911_vm6, %v230_v16, %v227_v35 }
  0x50   :  { %v236_v42 = vmul.f32 0.6931472, %v739_v37  ;;  %v956_v43 = vsub.f32 0.0, %v224_v34  ;;  %vm252_vm11 = vcmp.lt.f32.partialorder %v915_v19, 5.0  ;;  %vm253_vm12 = vcmp.lt.f32.partialorder %v932_v32, 5.0 }
  0x51   :  { %vm254_vm13 = vcmp.lt.f32.partialorder %v943_v36, 5.0  ;;  %v962_v44 = vadd.f32 -2.5, %v943_v36  ;;  %vm255_vm14 = vcmp.lt.f32.partialorder %v946_v38, 5.0  ;;  %v966_v45 = vadd.f32 -2.5, %v946_v38 }
  0x52   :  { %vm276_vm15 = vcmp.eq.f32.partialorder %v915_v19, inf  ;;  %744 = vrsqrt.f32 %v932_v32  ;;  %v242_v46 = vsel %vm919_vm7, %v239_v24, %v236_v42  ;;  %v972_v47 = vsub.f32 0.0, %v233_v41 }
  0x53   :  { %vm278_vm0 = vcmp.eq.f32.partialorder %v915_v19, 0.0  ;;  %v279_v48 = vand.u32 2147483648, %v915_v19  ;;  %vm256_vm1 = vcmp.lt.f32.partialorder %v956_v43, 5.0  ;;  %v978_v49 = vadd.f32 -2.5, %v956_v43 }
  0x54   :  { %746 = vrsqrt.f32 %v943_v36  ;;  %v982_v50 = vsub.f32 0.0, %v242_v46  ;;  %v286_v53 = vand.u32 2147483648, %v932_v32  ;;  %vm257_vm4 = vcmp.lt.f32.partialorder %v972_v47, 5.0 }
  0x55   :  { %748 = vrsqrt.f32 %v946_v38  ;;  %v741_v54 = vpop.eup %740  ;;  %v989_v59 = vadd.f32 -2.5, %v972_v47  ;;  %v293_v60 = vand.u32 2147483648, %v943_v36  ;;  %vm292_vm7 = vcmp.eq.f32.partialorder %v943_v36, 0.0 }
  0x56   :  { %vm258_vm6 = vcmp.lt.f32.partialorder %v982_v50, 5.0  ;;  %v995_v61 = vadd.f32 -2.5, %v982_v50  ;;  %v268_v62 = vmul.f32 %v741_v54, %v901_v7  ;;  %750 = vrsqrt.f32 %v956_v43 }
  0x57   :  { %v743_v0 = vpop.eup %742  ;;  %v300_v2 = vand.u32 2147483648, %v946_v38  ;;  %752 = vrsqrt.f32 %v972_v47  ;;  %vm304_vm5 = vcmp.eq.f32.partialorder %v956_v43, inf  ;;  %v307_v6 = vand.u32 2147483648, %v956_v43 }
  0x58   :  { %v270_v3 = vsel %vm269_vm8, %v901_v7, %v268_v62  ;;  %v275_v4 = vmul.f32 %v743_v0, %v915_v19  ;;  %vm306_vm3 = vcmp.eq.f32.partialorder %v956_v43, 0.0  ;;  %vm311_vm2 = vcmp.eq.f32.partialorder %v972_v47, inf }
  0x59   :  { %v273_v9 = vsel %vm271_vm10, %v272_v40, %v270_v3  ;;  %v314_v10 = vand.u32 2147483648, %v972_v47  ;;  %754 = vrsqrt.f32 %v982_v50  ;;  %vm313_vm8 = vcmp.eq.f32.partialorder %v972_v47, 0.0 }
  0x5a   :  { %v277_v11 = vsel %vm276_vm15, %v915_v19, %v275_v4  ;;  %v321_v13 = vand.u32 2147483648, %v982_v50  ;;  %v688_v8 = vadd.f32 -3.0, %v273_v9  ;;  %v805_v14 = vmov -0.00020021426  }
  0x5b   :  { %v339_v15 = vsel %vm251_vm9, 2.8102264e-08, %v805_v14  ;;  %v280_v18 = vsel %vm278_vm0, %v279_v48, %v277_v11  ;;  %vm318_vm10 = vcmp.eq.f32.partialorder %v982_v50, inf  ;;  %v340_v12 = vsel %vm252_vm11, 2.8102264e-08, %v805_v14 }
  0x5c   :  { %v745_v16 = vpop.eup %744  ;;  %v341_v20 = vsel %vm253_vm12, 2.8102264e-08, %v805_v14  ;;  %v342_v21 = vsel %vm254_vm13, 2.8102264e-08, %v805_v14  ;;  %v689_v22 = vadd.f32 -3.0, %v280_v18  ;;  %v1037_v24 = vsel %vm251_vm9, %v935_v33, %v688_v8 }
  0x5d   :  { %v282_v23 = vmul.f32 %v745_v16, %v932_v32  ;;  %v343_v26 = vsel %vm255_vm14, 2.8102264e-08, %v805_v14  ;;  %v344_v31 = vsel %vm256_vm1, 2.8102264e-08, %v805_v14  ;;  %v345_v34 = vsel %vm257_vm4, 2.8102264e-08, %v805_v14 }
  0x5e   :  { %v747_v27 = vpop.eup %746  ;;  %v346_v35 = vsel %vm258_vm6, 2.8102264e-08, %v805_v14  ;;  %v355_v37 = vmul.f32 %v339_v15, %v1037_v24  ;;  %vm1417_vm0 = vcmp.eq.f32.partialorder %v932_v32, inf  ;;  %v1055_v42 = vsel %vm252_vm11, %v938_v28, %v689_v22 }
  0x5f   :  { %v749_v40 = vpop.eup %748  ;;  %v284_v33 = vsel %vm1417_vm0, %v932_v32, %v282_v23  ;;  %v289_v41 = vmul.f32 %v747_v27, %v943_v36  ;;  %v806_v46 = vmov 0.00010095056   ;;  %vm1418_vm15 = vcmp.eq.f32.partialorder %v932_v32, 0.0 }
  0x60   :  { %v347_v48 = vsel %vm251_vm9, 3.4327394e-07, %v806_v46  ;;  %v287_v54 = vsel %vm1418_vm15, %v286_v53, %v284_v33  ;;  %v296_v62 = vmul.f32 %v749_v40, %v946_v38  ;;  %v348_v0 = vsel %vm252_vm11, 3.4327394e-07, %v806_v46  ;;  %v751_v4 = vpop.eup %750 }
  0x61   :  { %v349_v3 = vsel %vm253_vm12, 3.4327394e-07, %v806_v46  ;;  %vm1419_vm0 = vcmp.eq.f32.partialorder %v943_v36, inf  ;;  %v690_v9 = vadd.f32 -3.0, %v287_v54  ;;  %v350_v11 = vsel %vm254_vm13, 3.4327394e-07, %v806_v46  ;;  %v753_v8 = vpop.eup %752 }
  0x62   :  { %v291_v28 = vsel %vm1419_vm0, %v943_v36, %v289_v41  ;;  %v351_v53 = vsel %vm255_vm14, 3.4327394e-07, %v806_v46  ;;  %vm1420_vm15 = vcmp.eq.f32.partialorder %v946_v38, inf  ;;  %v303_v16 = vmul.f32 %v751_v4, %v956_v43 }
  0x63   :  { %v294_v14 = vsel %vm292_vm7, %v293_v60, %v291_v28  ;;  %v298_v15 = vsel %vm1420_vm15, %v946_v38, %v296_v62  ;;  %v352_v18 = vsel %vm256_vm1, 3.4327394e-07, %v806_v46  ;;  %vm1421_vm0 = vcmp.eq.f32.partialorder %v946_v38, 0.0  ;;  %v755_v60 = vpop.eup %754 }
  0x64   :  { %v301_v23 = vsel %vm1421_vm0, %v300_v2, %v298_v15  ;;  %v310_v22 = vmul.f32 %v753_v8, %v972_v47  ;;  %v691_v27 = vadd.f32 -3.0, %v294_v14  ;;  %v1087_v40 = vsel %vm253_vm12, %v950_v39, %v690_v9 }
  0x65   :  { %v305_v33 = vsel %vm304_vm5, %v956_v43, %v303_v16  ;;  %v692_v41 = vadd.f32 -3.0, %v301_v23  ;;  %v353_v54 = vsel %vm257_vm4, 3.4327394e-07, %v806_v46  ;;  %v354_v2 = vsel %vm258_vm6, 3.4327394e-07, %v806_v46 }
  0x66   :  { %v308_v62 = vsel %vm306_vm3, %v307_v6, %v305_v33  ;;  %v312_v39 = vsel %vm311_vm2, %v972_v47, %v310_v22  ;;  %v317_v4 = vmul.f32 %v755_v60, %v982_v50  ;;  %v1105_v28 = vsel %vm254_vm13, %v962_v44, %v691_v27 }
  0x67   :  { %v315_v9 = vsel %vm313_vm8, %v314_v10, %v312_v39  ;;  %v693_v8 = vadd.f32 -3.0, %v308_v62  ;;  %v1112_v46 = vsel %vm255_vm14, %v966_v45, %v692_v41  ;;  %v356_v6 = vmul.f32 %v340_v12, %v1055_v42 }
  0x68   :  { %v319_v14 = vsel %vm318_vm10, %v982_v50, %v317_v4  ;;  %v694_v15 = vadd.f32 -3.0, %v315_v9  ;;  %v357_v16 = vmul.f32 %v341_v20, %v1087_v40  ;;  %v358_v44 = vmul.f32 %v342_v21, %v1105_v28 }
  0x69   :  { %vm1422_vm2 = vcmp.eq.f32.partialorder %v982_v50, 0.0  ;;  %v1125_v23 = vsel %vm256_vm1, %v978_v49, %v693_v8  ;;  %v359_v45 = vmul.f32 %v343_v26, %v1112_v46  ;;  %v363_v12 = vadd.f32 %v355_v37, %v347_v48 }
  0x6a   :  { %v322_v10 = vsel %vm1422_vm2, %v321_v13, %v319_v14  ;;  %v1131_v27 = vsel %vm257_vm4, %v989_v59, %v694_v15  ;;  %v360_v20 = vmul.f32 %v344_v31, %v1125_v23  ;;  %v364_v21 = vadd.f32 %v356_v6, %v348_v0 }
  0x6b   :  { %v695_v22 = vadd.f32 -3.0, %v322_v10  ;;  %v361_v60 = vmul.f32 %v345_v34, %v1131_v27  ;;  %v365_v13 = vadd.f32 %v357_v16, %v349_v3  ;;  %v366_v33 = vadd.f32 %v358_v44, %v350_v11 }
  0x6c   :  { %v367_v41 = vadd.f32 %v359_v45, %v351_v53  ;;  %v368_v26 = vadd.f32 %v360_v20, %v352_v18  ;;  %v807_v37 = vmov 0.0013493432   ;;  %v379_v18 = vmul.f32 %v363_v12, %v1037_v24 }
  0x6d   :  { %v1138_v49 = vsel %vm258_vm6, %v995_v61, %v695_v22  ;;  %v371_v48 = vsel %vm251_vm9, -3.5233877e-06, %v807_v37  ;;  %v372_v59 = vsel %vm252_vm11, -3.5233877e-06, %v807_v37  ;;  %v369_v0 = vadd.f32 %v361_v60, %v353_v54 }
  0x6e   :  { %v362_v31 = vmul.f32 %v346_v35, %v1138_v49  ;;  %v373_v34 = vsel %vm253_vm12, -3.5233877e-06, %v807_v37  ;;  %v374_v3 = vsel %vm254_vm13, -3.5233877e-06, %v807_v37  ;;  %v375_v61 = vsel %vm255_vm14, -3.5233877e-06, %v807_v37 }
  0x6f   :  { %v376_v11 = vsel %vm256_vm1, -3.5233877e-06, %v807_v37  ;;  %v377_v53 = vsel %vm257_vm4, -3.5233877e-06, %v807_v37  ;;  %v378_v35 = vsel %vm258_vm6, -3.5233877e-06, %v807_v37  ;;  %v380_v54 = vmul.f32 %v364_v21, %v1055_v42 }
  0x70   :  { %v370_v62 = vadd.f32 %v362_v31, %v354_v2  ;;  %v381_v39 = vmul.f32 %v365_v13, %v1087_v40  ;;  %v382_v4 = vmul.f32 %v366_v33, %v1105_v28  ;;  %v383_v9 = vmul.f32 %v367_v41, %v1112_v46 }
  0x71   :  { %v384_v8 = vmul.f32 %v368_v26, %v1125_v23  ;;  %v385_v6 = vmul.f32 %v369_v0, %v1131_v27  ;;  %v387_v15 = vadd.f32 %v379_v18, %v371_v48  ;;  %v388_v16 = vadd.f32 %v380_v54, %v372_v59 }
  0x72   :  { %v386_v14 = vmul.f32 %v370_v62, %v1138_v49  ;;  %v389_v2 = vadd.f32 %v381_v39, %v373_v34  ;;  %v390_v44 = vadd.f32 %v382_v4, %v374_v3  ;;  %v391_v10 = vadd.f32 %v383_v9, %v375_v61 }
  0x73   :  { %v392_v45 = vadd.f32 %v384_v8, %v376_v11  ;;  %v393_v12 = vadd.f32 %v385_v6, %v377_v53  ;;  %v808_v20 = vmov -0.0036734284   ;;  %v403_v37 = vmul.f32 %v387_v15, %v1037_v24 }
  0x74   :  { %v394_v22 = vadd.f32 %v386_v14, %v378_v35  ;;  %v395_v21 = vsel %vm251_vm9, -4.3915065e-06, %v808_v20  ;;  %v396_v60 = vsel %vm252_vm11, -4.3915065e-06, %v808_v20  ;;  %v397_v13 = vsel %vm253_vm12, -4.3915065e-06, %v808_v20 }
  0x75   :  { %v398_v33 = vsel %vm254_vm13, -4.3915065e-06, %v808_v20  ;;  %v399_v41 = vsel %vm255_vm14, -4.3915065e-06, %v808_v20  ;;  %v400_v26 = vsel %vm256_vm1, -4.3915065e-06, %v808_v20  ;;  %v404_v31 = vmul.f32 %v388_v16, %v1055_v42 }
  0x76   :  { %v401_v48 = vsel %vm257_vm4, -4.3915065e-06, %v808_v20  ;;  %v402_v59 = vsel %vm258_vm6, -4.3915065e-06, %v808_v20  ;;  %v405_v0 = vmul.f32 %v389_v2, %v1087_v40  ;;  %v406_v34 = vmul.f32 %v390_v44, %v1105_v28 }
  0x77   :  { %v407_v3 = vmul.f32 %v391_v10, %v1112_v46  ;;  %v408_v61 = vmul.f32 %v392_v45, %v1125_v23  ;;  %v409_v11 = vmul.f32 %v393_v12, %v1131_v27  ;;  %v410_v53 = vmul.f32 %v394_v22, %v1138_v49 }
  0x78   :  { %v411_v18 = vadd.f32 %v403_v37, %v395_v21  ;;  %v412_v62 = vadd.f32 %v404_v31, %v396_v60  ;;  %v413_v35 = vadd.f32 %v405_v0, %v397_v13  ;;  %v414_v54 = vadd.f32 %v406_v34, %v398_v33 }
  0x79   :  { %v415_v39 = vadd.f32 %v407_v3, %v399_v41  ;;  %v416_v4 = vadd.f32 %v408_v61, %v400_v26  ;;  %v417_v9 = vadd.f32 %v409_v11, %v401_v48  ;;  %v418_v8 = vadd.f32 %v410_v53, %v402_v59 }
  0x7a   :  { %v809_v6 = vmov 0.0057395077   ;;  %v427_v45 = vmul.f32 %v411_v18, %v1037_v24  ;;  %v428_v20 = vmul.f32 %v412_v62, %v1055_v42  ;;  %v429_v21 = vmul.f32 %v413_v35, %v1087_v40 }
  0x7b   :  { %v419_v14 = vsel %vm251_vm9, 0.00021858087, %v809_v6  ;;  %v420_v15 = vsel %vm252_vm11, 0.00021858087, %v809_v6  ;;  %v421_v16 = vsel %vm253_vm12, 0.00021858087, %v809_v6  ;;  %v430_v60 = vmul.f32 %v414_v54, %v1105_v28 }
  0x7c   :  { %v422_v2 = vsel %vm254_vm13, 0.00021858087, %v809_v6  ;;  %v423_v44 = vsel %vm255_vm14, 0.00021858087, %v809_v6  ;;  %v424_v10 = vsel %vm256_vm1, 0.00021858087, %v809_v6  ;;  %v431_v13 = vmul.f32 %v415_v39, %v1112_v46 }
  0x7d   :  { %v425_v12 = vsel %vm257_vm4, 0.00021858087, %v809_v6  ;;  %v426_v22 = vsel %vm258_vm6, 0.00021858087, %v809_v6  ;;  %v432_v33 = vmul.f32 %v416_v4, %v1125_v23  ;;  %v433_v41 = vmul.f32 %v417_v9, %v1131_v27 }
  0x7e   :  { %v434_v26 = vmul.f32 %v418_v8, %v1138_v49  ;;  %v435_v37 = vadd.f32 %v427_v45, %v419_v14  ;;  %v436_v48 = vadd.f32 %v428_v20, %v420_v15  ;;  %v437_v59 = vadd.f32 %v429_v21, %v421_v16 }
  0x7f   :  { %v438_v31 = vadd.f32 %v430_v60, %v422_v2  ;;  %v439_v0 = vadd.f32 %v431_v13, %v423_v44  ;;  %v440_v34 = vadd.f32 %v432_v33, %v424_v10  ;;  %v441_v3 = vadd.f32 %v433_v41, %v425_v12 }
  0x80   :  { %v442_v61 = vadd.f32 %v434_v26, %v426_v22  ;;  %v810_v11 = vmov -0.0076224613   ;;  %v451_v4 = vmul.f32 %v435_v37, %v1037_v24  ;;  %v452_v6 = vmul.f32 %v436_v48, %v1055_v42 }
  0x81   :  { %v443_v53 = vsel %vm251_vm9, -0.001253725, %v810_v11  ;;  %v444_v18 = vsel %vm252_vm11, -0.001253725, %v810_v11  ;;  %v445_v62 = vsel %vm253_vm12, -0.001253725, %v810_v11  ;;  %v453_v14 = vmul.f32 %v437_v59, %v1087_v40 }
  0x82   :  { %v446_v35 = vsel %vm254_vm13, -0.001253725, %v810_v11  ;;  %v447_v54 = vsel %vm255_vm14, -0.001253725, %v810_v11  ;;  %v448_v39 = vsel %vm256_vm1, -0.001253725, %v810_v11  ;;  %v454_v15 = vmul.f32 %v438_v31, %v1105_v28 }
  0x83   :  { %v449_v9 = vsel %vm257_vm4, -0.001253725, %v810_v11  ;;  %v450_v8 = vsel %vm258_vm6, -0.001253725, %v810_v11  ;;  %v455_v16 = vmul.f32 %v439_v0, %v1112_v46  ;;  %v456_v2 = vmul.f32 %v440_v34, %v1125_v23 }
  0x84   :  { %v457_v44 = vmul.f32 %v441_v3, %v1131_v27  ;;  %v458_v10 = vmul.f32 %v442_v61, %v1138_v49  ;;  %v459_v45 = vadd.f32 %v451_v4, %v443_v53  ;;  %v460_v12 = vadd.f32 %v452_v6, %v444_v18 }
  0x85   :  { %v461_v22 = vadd.f32 %v453_v14, %v445_v62  ;;  %v462_v20 = vadd.f32 %v454_v15, %v446_v35  ;;  %v463_v21 = vadd.f32 %v455_v16, %v447_v54  ;;  %v464_v60 = vadd.f32 %v456_v2, %v448_v39 }
  0x86   :  { %v465_v13 = vadd.f32 %v457_v44, %v449_v9  ;;  %v466_v33 = vadd.f32 %v458_v10, %v450_v8  ;;  %v811_v41 = vmov 0.0094388705   ;;  %v475_v34 = vmul.f32 %v459_v45, %v1037_v24 }
  0x87   :  { %v467_v26 = vsel %vm251_vm9, -0.0041776816, %v811_v41  ;;  %v468_v37 = vsel %vm252_vm11, -0.0041776816, %v811_v41  ;;  %v469_v48 = vsel %vm253_vm12, -0.0041776816, %v811_v41  ;;  %v476_v11 = vmul.f32 %v460_v12, %v1055_v42 }
  0x88   :  { %v470_v59 = vsel %vm254_vm13, -0.0041776816, %v811_v41  ;;  %v471_v31 = vsel %vm255_vm14, -0.0041776816, %v811_v41  ;;  %v472_v0 = vsel %vm256_vm1, -0.0041776816, %v811_v41  ;;  %v477_v53 = vmul.f32 %v461_v22, %v1087_v40 }
  0x89   :  { %v473_v3 = vsel %vm257_vm4, -0.0041776816, %v811_v41  ;;  %v474_v61 = vsel %vm258_vm6, -0.0041776816, %v811_v41  ;;  %v478_v18 = vmul.f32 %v462_v20, %v1105_v28  ;;  %v479_v62 = vmul.f32 %v463_v21, %v1112_v46 }
  0x8a   :  { %v480_v35 = vmul.f32 %v464_v60, %v1125_v23  ;;  %v481_v54 = vmul.f32 %v465_v13, %v1131_v27  ;;  %v482_v39 = vmul.f32 %v466_v33, %v1138_v49  ;;  %v483_v4 = vadd.f32 %v475_v34, %v467_v26 }
  0x8b   :  { %v484_v9 = vadd.f32 %v476_v11, %v468_v37  ;;  %v485_v8 = vadd.f32 %v477_v53, %v469_v48  ;;  %v486_v6 = vadd.f32 %v478_v18, %v470_v59  ;;  %v487_v14 = vadd.f32 %v479_v62, %v471_v31 }
  0x8c   :  { %v488_v15 = vadd.f32 %v480_v35, %v472_v0  ;;  %v489_v16 = vadd.f32 %v481_v54, %v473_v3  ;;  %v490_v2 = vadd.f32 %v482_v39, %v474_v61  ;;  %v812_v44 = vmov 1.001674  }
  0x8d   :  { %v491_v10 = vsel %vm251_vm9, 0.24664073, %v812_v44  ;;  %v492_v45 = vsel %vm252_vm11, 0.24664073, %v812_v44  ;;  %v493_v12 = vsel %vm253_vm12, 0.24664073, %v812_v44  ;;  %v499_v60 = vmul.f32 %v483_v4, %v1037_v24 }
  0x8e   :  { %v494_v22 = vsel %vm254_vm13, 0.24664073, %v812_v44  ;;  %v495_v20 = vsel %vm255_vm14, 0.24664073, %v812_v44  ;;  %v496_v21 = vsel %vm256_vm1, 0.24664073, %v812_v44  ;;  %v500_v41 = vmul.f32 %v484_v9, %v1055_v42 }
  0x8f   :  { %v497_v13 = vsel %vm257_vm4, 0.24664073, %v812_v44  ;;  %v498_v33 = vsel %vm258_vm6, 0.24664073, %v812_v44  ;;  %v501_v26 = vmul.f32 %v485_v8, %v1087_v40  ;;  %v502_v37 = vmul.f32 %v486_v6, %v1105_v28 }
  0x90   :  { %v503_v48 = vmul.f32 %v487_v14, %v1112_v46  ;;  %v504_v59 = vmul.f32 %v488_v15, %v1125_v23  ;;  %v505_v31 = vmul.f32 %v489_v16, %v1131_v27  ;;  %v506_v0 = vmul.f32 %v490_v2, %v1138_v49 }
  0x91   :  { %v507_v34 = vadd.f32 %v499_v60, %v491_v10  ;;  %v508_v3 = vadd.f32 %v500_v41, %v492_v45  ;;  %v509_v61 = vadd.f32 %v501_v26, %v493_v12  ;;  %v510_v11 = vadd.f32 %v502_v37, %v494_v22 }
  0x92   :  { %v511_v53 = vadd.f32 %v503_v48, %v495_v20  ;;  %v512_v18 = vadd.f32 %v504_v59, %v496_v21  ;;  %v513_v62 = vadd.f32 %v505_v31, %v497_v13  ;;  %v514_v35 = vadd.f32 %v506_v0, %v498_v33 }
  0x93   :  { %v813_v54 = vmov 2.8329768   ;;  %v523_v15 = vmul.f32 %v507_v34, %v1037_v24  ;;  %v524_v32 = vmul.f32 %v508_v3, %v1055_v42  ;;  %v525_v16 = vmul.f32 %v509_v61, %v1087_v40 }
  0x94   :  { %v515_v39 = vsel %vm251_vm9, 1.5014094, %v813_v54  ;;  %v516_v4 = vsel %vm252_vm11, 1.5014094, %v813_v54  ;;  %v517_v9 = vsel %vm253_vm12, 1.5014094, %v813_v54  ;;  %v526_v38 = vmul.f32 %v510_v11, %v1105_v28 }
  0x95   :  { %v518_v8 = vsel %vm254_vm13, 1.5014094, %v813_v54  ;;  %v519_v6 = vsel %vm255_vm14, 1.5014094, %v813_v54  ;;  %v520_v14 = vsel %vm256_vm1, 1.5014094, %v813_v54  ;;  %v527_v43 = vmul.f32 %v511_v53, %v1112_v46 }
  0x96   :  { %v521_v7 = vsel %vm257_vm4, 1.5014094, %v813_v54  ;;  %v522_v19 = vsel %vm258_vm6, 1.5014094, %v813_v54  ;;  %vm1306_vm9 = vcmp.eq.f32.partialorder %v539_v17, 1.0  ;;  %v528_v47 = vmul.f32 %v512_v18, %v1125_v23 }
  0x97   :  { %v529_v24 = vmul.f32 %v513_v62, %v1131_v27  ;;  %v530_v50 = vmul.f32 %v514_v35, %v1138_v49  ;;  %v531_v2 = vadd.f32 %v523_v15, %v515_v39  ;;  %v532_v42 = vadd.f32 %v524_v32, %v516_v4 }
  0x98   :  { %v533_v44 = vadd.f32 %v525_v16, %v517_v9  ;;  %v534_v40 = vadd.f32 %v526_v38, %v518_v8  ;;  %v535_v10 = vadd.f32 %v527_v43, %v519_v6  ;;  %v536_v45 = vadd.f32 %v528_v47, %v520_v14 }
  0x99   :  { %v537_v17 = vadd.f32 %v529_v24, %v521_v7  ;;  %v538_v12 = vadd.f32 %v530_v50, %v522_v19  ;;  %v543_v22 = vand.u32 2147483647, %v857_v57  ;;  %v544_v28 = vand.u32 2147483647, %v859_v58 }
  0x9a   :  { %v545_v46 = vand.u32 2147483647, %v865_v63  ;;  %v546_v23 = vand.u32 2147483647, %v871_v5  ;;  %vm1321_vm11 = vcmp.eq.f32.partialorder %v540_v25, 1.0  ;;  %vm1327_vm12 = vcmp.eq.f32.partialorder %v541_v29, 1.0 }
  0x9b   :  { %vm1333_vm13 = vcmp.eq.f32.partialorder %v542_v30, 1.0  ;;  %vm1337_vm14 = vcmp.eq.f32.partialorder %v543_v22, 1.0  ;;  %vm1341_vm1 = vcmp.eq.f32.partialorder %v544_v28, 1.0  ;;  %v555_v29 = vmul.f32 inf, %v849_v51 }
  0x9c   :  { %vm1345_vm3 = vcmp.eq.f32.partialorder %v545_v46, 1.0  ;;  %vm1350_vm4 = vcmp.eq.f32.partialorder %v546_v23, 1.0  ;;  %v556_v30 = vmul.f32 inf, %v851_v52  ;;  %v557_v33 = vmul.f32 inf, %v853_v55 }
  0x9d   :  { %v558_v41 = vmul.f32 inf, %v855_v56  ;;  %v559_v26 = vmul.f32 inf, %v857_v57  ;;  %v560_v37 = vmul.f32 inf, %v859_v58  ;;  %v561_v48 = vmul.f32 inf, %v865_v63 }
  0x9e   :  { %v562_v59 = vmul.f32 inf, %v871_v5  ;;  %v563_v31 = vmul.f32 %v531_v2, %v849_v51  ;;  %v564_v0 = vmul.f32 %v532_v42, %v851_v52  ;;  %v565_v34 = vmul.f32 %v533_v44, %v853_v55 }
  0x9f   :  { %v566_v3 = vmul.f32 %v534_v40, %v855_v56  ;;  %v567_v61 = vmul.f32 %v535_v10, %v857_v57  ;;  %v568_v11 = vmul.f32 %v536_v45, %v859_v58  ;;  %v569_v53 = vmul.f32 %v537_v17, %v865_v63 }
  0xa0   :  { %v570_v18 = vmul.f32 %v538_v12, %v871_v5  ;;  %v571_v62 = vsel %vm1306_vm9, %v555_v29, %v563_v31  ;;  %v572_v51 = vsel %vm1321_vm11, %v556_v30, %v564_v0  ;;  %v573_v52 = vsel %vm1327_vm12, %v557_v33, %v565_v34 }
  0xa1   :  { %v574_v55 = vsel %vm1333_vm13, %v558_v41, %v566_v3  ;;  %v575_v56 = vsel %vm1337_vm14, %v559_v26, %v567_v61  ;;  %v576_v57 = vsel %vm1341_vm1, %v560_v37, %v568_v11  ;;  %v577_v58 = vsel %vm1345_vm3, %v561_v48, %v569_v53  ;;  %v611_v11 = vld [vmem:[#allocation3] sm:$0xff]  ;;  %v612_v53 = vld [vmem:[#allocation3 + $0x8] sm:$0xff] }
  0xa2   :  { %v578_v63 = vsel %vm1350_vm4, %v562_v59, %v570_v18  ;;  %v579_v5 = vmul.f32 1.4142135, %v571_v62  ;;  %v580_v35 = vmul.f32 1.4142135, %v572_v51  ;;  %v581_v54 = vmul.f32 1.4142135, %v573_v52 }
  0xa3   :  { %v582_v39 = vmul.f32 1.4142135, %v574_v55  ;;  %v583_v4 = vmul.f32 1.4142135, %v575_v56  ;;  %v584_v9 = vmul.f32 1.4142135, %v576_v57 }
  0xa4   :  { %v585_v8 = vmul.f32 1.4142135, %v577_v58  ;;  %v586_v6 = vmul.f32 1.4142135, %v578_v63  ;;  %v587_v14 = vmul.f32 10.0, %v579_v5  ;;  %v588_v15 = vmul.f32 10.0, %v580_v35 }
  0xa5   :  { %v589_v7 = vmul.f32 10.0, %v581_v54  ;;  %v590_v19 = vmul.f32 10.0, %v582_v39  ;;  %v591_v32 = vmul.f32 10.0, %v583_v4  ;;  %v592_v16 = vmul.f32 10.0, %v584_v9 }
  0xa6   :  { %v593_v36 = vmul.f32 10.0, %v585_v8  ;;  %v594_v38 = vmul.f32 10.0, %v586_v6  ;;  %v696_v43 = vtrunc.f32 %v587_v14  ;;  %v698_v47 = vtrunc.f32 %v588_v15 }
  0xa7   :  { %v700_v24 = vtrunc.f32 %v589_v7  ;;  %v702_v50 = vtrunc.f32 %v590_v19  ;;  %v704_v2 = vtrunc.f32 %v591_v32  ;;  %v706_v42 = vtrunc.f32 %v592_v16 }
  0xa8   :  { %v697_v44 = vcvt.f32.s32 %v696_v43  ;;  %v699_v40 = vcvt.f32.s32 %v698_v47  ;;  %v708_v10 = vtrunc.f32 %v593_v36  ;;  %v710_v45 = vtrunc.f32 %v594_v38 }
  0xa9   :  { %v701_v17 = vcvt.f32.s32 %v700_v24  ;;  %v703_v12 = vcvt.f32.s32 %v702_v50  ;;  %v705_v22 = vcvt.f32.s32 %v704_v2  ;;  %v707_v28 = vcvt.f32.s32 %v706_v42 }
  0xaa   :  { %v709_v46 = vcvt.f32.s32 %v708_v10  ;;  %v711_v23 = vcvt.f32.s32 %v710_v45  ;;  %v603_v27 = vcvt.s32.f32 %v697_v44  ;;  %v604_v49 = vcvt.s32.f32 %v699_v40 }
  0xab   :  { %v605_v20 = vcvt.s32.f32 %v701_v17  ;;  %v606_v21 = vcvt.s32.f32 %v703_v12  ;;  %v607_v25 = vcvt.s32.f32 %v705_v22  ;;  %v608_v60 = vcvt.s32.f32 %v707_v28 }
  0xac   :  { %v609_v29 = vcvt.s32.f32 %v709_v46  ;;  %v610_v13 = vcvt.s32.f32 %v711_v23  ;;  %v814_v30 = vmov 1983009808   ;;  %v621_v41 = vcombine.low %v603_v27, %v604_v49 }
  0xad   :  { %v624_v33 = vunpack.c.l.s4 %v814_v30  ;;  %v622_v26 = vcombine.low %v605_v20, %v606_v21  ;;  %v638_v48 = vcombine.low %v607_v25, %v608_v60 }
  0xae   :  { %v639_v59 = vcombine.low %v609_v29, %v610_v13 }
  0xaf   :  { %v625_v37 = vunpack.c.0.s8 %v624_v33 }
  0xb1   :  { %v628_v31 = vsub.s32 %v625_v37, %v843_v1 }
  0xb3   :  { %v629_v0 = vrot.slane %v621_v41, %v628_v31  ;;  %v636_v34 = vrot.slane %v622_v26, %v628_v31  ;;  %v646_v3 = vrot.slane %v638_v48, %v628_v31  ;;  %v653_v61 = vrot.slane %v639_v59, %v628_v31 }
  0xb5   :  { %v637_v18 = vcombine.low %v629_v0, %v636_v34  ;;  %v654_v62 = vcombine.low %v646_v3, %v653_v61 }
  0xb7   :  { %v657_v51 = vadd.f32 %v637_v18, %v611_v11  ;;  %v658_v52 = vadd.f32 %v654_v62, %v612_v53 }
  0xb9   :  { %v659_v55 = vmax.f32 %v657_v51, 0.0  ;;  %v660_v56 = vmax.f32 %v658_v52, 0.0 }
  0xbb   :  { %v661_v57 = vmin.f32 %v659_v55, 255.0  ;;  %v662_v58 = vmin.f32 %v660_v56, 255.0 }
  0xbd   :  { %663 = vst [vmem:[#allocation6] sm:$0xff] %v661_v57  ;;  %664 = vst [vmem:[#allocation6 + $0x8] sm:$0xff] %v662_v58 }
  0xbe   :  { %789 = shalt.err (!%p786_p12)
}
  0xbf   :  { %s790_s27 = scalar_lea.hbm %s1400_s2, 256 }
  0xc0   :  { %p791_p13 = scmp.ne.s32.totalorder %s1400_s2, %s790_s27  ;;  %p794_p0 = scmp.lt.u32.totalorder %s790_s27, %s1400_s2 }
  0xc2   :  { %p796_p1 = pnand %p794_p0, %p791_p13 }
  0xc4   :  { %799 = shalt.err (!%p796_p1)
}
  0xc5   :  { %674 = dma.vmem_to_hbm [thread:$0]  %s672_s1, 256, %s1400_s2, [#allocation5]  }
  0xc6   :  { %802 = dma.done.wait [#allocation5], 256  }
  0xc7   :  { %803 = vsyncadd [#allocation5], 4294967040 }
  0xc8   :  { %678 = vsyncpa [#allocation4], 1 }
  0xc9   :  { %679 = vsyncpa [#allocation5], 1 }

</bundles_post_ra>
